<compile_context>
chip_gen: v7x
topology: tpu7x:2x2x1
jax: 0.10.0
libtpu: 0.0.40
codegen_flags: <defaults>
</compile_context>

<pallas_src>
import functools

import jax
import jax.numpy as jnp
from jax import lax
from jax.experimental import pallas as pl
from jax.experimental.pallas import tpu as pltpu

_SQRT_HALF = 0.7071067811865476


def _resmlp_kernel(x_ref, w_ref, bgb_ref, o_ref, *scratch,
                   matmul_dtype, h, tk, num_k, use_state_scratch, approx_gelu):
    si = 0
    if use_state_scratch:
        state_ref = scratch[si]
        si += 1
    else:
        state_ref = o_ref                       # residual state lives in the resident out block
    y_ref = scratch[si] if num_k > 1 else None  # partial-matmul accumulator (K-split only)

    k = pl.program_id(1)
    last_block = pl.num_programs(1) - 1
    j = pl.program_id(2) if num_k > 1 else None

    first = (k == 0) if num_k == 1 else jnp.logical_and(k == 0, j == 0)

    # Initialize the running residual state with the input at the very first step.
    @pl.when(first)
    def _():
        state_ref[...] = x_ref[...].astype(jnp.float32)

    inv_h = jnp.float32(1.0 / h)

    def epilogue(y, residual):
        # bias
        y = y + bgb_ref[0:1, :]
        # LayerNorm over last dim (eps=1e-5, biased variance, affine) -- one-pass stats.
        s1 = jnp.sum(y, axis=-1, keepdims=True)
        s2 = jnp.sum(y * y, axis=-1, keepdims=True)
        mean = s1 * inv_h
        var = s2 * inv_h - mean * mean
        yn = (y - mean) * lax.rsqrt(var + 1e-5)
        yn = yn * bgb_ref[1:2, :] + bgb_ref[2:3, :]          # gamma, beta
        # GELU: exact erf (torch nn.GELU default) or tanh approximation (EUP-friendly).
        if approx_gelu:
            yg = jax.nn.gelu(yn, approximate=True)
        else:
            yg = 0.5 * yn * (1.0 + lax.erf(yn * jnp.float32(_SQRT_HALF)))
        # Dropout: identity in eval mode.
        new_state = residual + yg
        state_ref[...] = new_state
        if use_state_scratch:  # non-f32 output: cast/store once at the last block
            @pl.when(k == last_block)
            def _():
                o_ref[...] = new_state.astype(o_ref.dtype)

    if num_k == 1:
        x = state_ref[...]                                    # (TB, h) f32 current state
        y = jnp.dot(x.astype(matmul_dtype), w_ref[...],
                    preferred_element_type=jnp.float32)
        epilogue(y, x)
    else:
        @pl.when(j == 0)
        def _():
            y_ref[...] = jnp.zeros_like(y_ref)
        off = pl.multiple_of(j * tk, tk)
        x_slab = state_ref[:, pl.ds(off, tk)]                 # (TB, TK) slice of the state
        y_ref[...] += jnp.dot(x_slab.astype(matmul_dtype), w_ref[...],
                              preferred_element_type=jnp.float32)

        @pl.when(j == num_k - 1)
        def _():
            epilogue(y_ref[...], state_ref[...])


def _device_kind():
    try:
        return jax.devices()[0].device_kind
    except Exception:
        return ""


def _tpu_roofline(kind):
    """(batch-tile target, VMEM cap, dual-TensorCore) per generation.

    Weight bytes are re-streamed once per batch tile, so arithmetic intensity on the weight
    stream is ~TB flops/byte (bf16); TB >= peak_bf16_flops / HBM_BW keeps the MXU busy."""
    k = (kind or "").lower()
    if "v5e" in k or "v5 lite" in k or "v5lite" in k:
        return 256, 100 << 20, False        # ~197 TF/s / ~0.82 TB/s  -> ~240
    if "v6" in k:
        return 768, 100 << 20, False        # ~918 TF/s / ~1.4 TB/s   -> ~575
    if "v7" in k or "7x" in k:
        return 512, 48 << 20, True          # per-TC ~498 TF/s / ~1.6 TB/s -> ~320; 64 MiB VMEM
    return 512, 64 << 20, False             # unknown / v4 / v5p: conservative middle ground


def _largest_tile(B, granule, upper):
    """Largest divisor of B that is a multiple of `granule` and <= upper (None if none)."""
    upper = min(upper, B)
    upper -= upper % granule
    for d in range(upper, 0, -granule):
        if B % d == 0:
            return d
    return None


def _weight_spec(block_shape, index_map, n_buf):
    if n_buf > 2:
        try:  # deeper weight pipeline hides the k=0 DMA bubble of each new batch tile
            return pl.BlockSpec(block_shape, index_map, pipeline_mode=pl.Buffered(n_buf))
        except Exception:
            pass  # JAX without pipeline_mode: fall back to default double-buffering
    return pl.BlockSpec(block_shape, index_map)


def resmlp(x, W, b, gamma, beta, *,
           batch_tile=None, k_tile=None, weight_dtype=jnp.bfloat16,
           weight_buffers=2, approximate_gelu=False, vmem_limit_bytes=None):
    n_blocks, h, h2 = W.shape
    assert h == h2, "square per-block weights expected"
    B = x.shape[0]
    assert x.shape == (B, h)

    out_dtype = x.dtype
    x_isz = x.dtype.itemsize
    wbytes = jnp.dtype(weight_dtype).itemsize

    target_tb, vmem_cap, dual_tc = _tpu_roofline(_device_kind())
    if batch_tile is not None:
        target_tb = int(batch_tile)

    # --- batch tile ---------------------------------------------------------
    granule = 16 if x_isz == 2 else 8            # bf16 packed sublane tile is (16, 128)
    if B <= target_tb:
        TB = B                                   # small problem: each W[k] streamed exactly once
    else:
        TB = _largest_tile(B, granule, target_tb)
        if TB is None:
            TB = _largest_tile(B, granule, B)
        if TB is None:
            TB = B  # TODO(synk): masked tail tile for ragged batch sizes
    if dual_tc and B // TB < 2:                  # v7x: keep both TensorCores busy
        half = _largest_tile(B, granule, B // 2)
        if half is not None:
            TB = half
    num_b_tiles = B // TB

    # --- VMEM budget & K split ----------------------------------------------
    use_state_scratch = out_dtype != jnp.float32
    act_bytes = (TB * h * (2 * x_isz                         # x (double-buffered)
                           + 2 * out_dtype.itemsize          # out (double-buffered)
                           + (4 if use_state_scratch else 0)  # f32 residual state scratch
                           + 4)                              # f32 y accumulator (worst case)
                 + 2 * 3 * h * 4)                            # packed bias/gamma/beta
    weight_budget = max(int(0.85 * vmem_cap) - act_bytes, 2 * 128 * h * wbytes)

    if k_tile is not None:
        TK = int(k_tile)
        assert h % TK == 0, "k_tile must divide h"
    elif 2 * h * h * wbytes <= weight_budget or h % 128 != 0:
        TK = h
    else:
        TK = None
        cands = [d for d in range(128, h + 1, 128) if h % d == 0]
        for c in sorted(cands, reverse=True):
            if 2 * c * h * wbytes <= weight_budget:
                TK = c
                break
        if TK is None:
            TK = cands[0] if cands else h
    num_k = h // TK

    n_buf = max(2, int(weight_buffers))
    if n_buf > 2 and n_buf * TK * h * wbytes > weight_budget:
        n_buf = 2

    footprint = act_bytes + n_buf * TK * h * wbytes
    if vmem_limit_bytes is None:
        vmem_limit_bytes = min(vmem_cap, max(32 << 20, int(1.25 * footprint) + (8 << 20)))

    # --- kernel & specs -------------------------------------------------------
    kernel = functools.partial(
        _resmlp_kernel, matmul_dtype=weight_dtype, h=h, tk=TK, num_k=num_k,
        use_state_scratch=use_state_scratch, approx_gelu=approximate_gelu)

    Wq = W.astype(weight_dtype)
    bgb = jnp.stack([b, gamma, beta], axis=1).astype(jnp.float32)   # (n_blocks, 3, h)

    scratch_shapes = []
    if use_state_scratch:
        scratch_shapes.append(pltpu.VMEM((TB, h), jnp.float32))     # residual state
    if num_k > 1:
        scratch_shapes.append(pltpu.VMEM((TB, h), jnp.float32))     # partial-product accumulator

    if num_k == 1:
        grid = (num_b_tiles, n_blocks)
        in_specs = [
            pl.BlockSpec((TB, h), lambda i, k: (i, 0)),                  # x (per batch tile)
            _weight_spec((None, h, h), lambda i, k: (k, 0, 0), n_buf),   # W[k]
            pl.BlockSpec((None, 3, h), lambda i, k: (k, 0, 0)),          # [b;gamma;beta][k]
        ]
        out_specs = pl.BlockSpec((TB, h), lambda i, k: (i, 0))
        dims = ("parallel", "arbitrary")
    else:
        grid = (num_b_tiles, n_blocks, num_k)
        in_specs = [
            pl.BlockSpec((TB, h), lambda i, k, j: (i, 0)),
            _weight_spec((None, TK, h), lambda i, k, j: (k, j, 0), n_buf),  # W[k] slab j
            pl.BlockSpec((None, 3, h), lambda i, k, j: (k, 0, 0)),
        ]
        out_specs = pl.BlockSpec((TB, h), lambda i, k, j: (i, 0))
        dims = ("parallel", "arbitrary", "arbitrary")

    cost = pl.CostEstimate(
        flops=2 * B * h * h * n_blocks,
        transcendentals=2 * B * h * n_blocks,
        bytes_accessed=(num_b_tiles * n_blocks * h * h * wbytes
                        + B * h * (x_isz + out_dtype.itemsize)
                        + n_blocks * 3 * h * 4),
    )

    return pl.pallas_call(
        kernel,
        out_shape=jax.ShapeDtypeStruct((B, h), out_dtype),
        grid_spec=pltpu.PrefetchScalarGridSpec(
            num_scalar_prefetch=0,
            grid=grid,
            in_specs=in_specs,
            out_specs=out_specs,
            scratch_shapes=scratch_shapes,
        ),
        compiler_params=pltpu.CompilerParams(
            dimension_semantics=dims,
            vmem_limit_bytes=int(vmem_limit_bytes),
        ),
        cost_estimate=cost,
    )(x, Wq, bgb)


def resmlp_ref(x, W, b, gamma, beta, weight_dtype=jnp.bfloat16):
    """Pure-JAX reference of the PyTorch forward (eval mode), mirroring the kernel's
    mixed-precision policy (bf16 matmul operands, f32 everywhere else)."""
    xf = x.astype(jnp.float32)
    Wq = W.astype(weight_dtype)
    for k in range(W.shape[0]):
        y = jnp.dot(xf.astype(weight_dtype), Wq[k],
                    preferred_element_type=jnp.float32) + b[k]
        mean = jnp.mean(y, axis=-1, keepdims=True)
        var = jnp.mean((y - mean) ** 2, axis=-1, keepdims=True)
        y = (y - mean) * lax.rsqrt(var + 1e-5)
        y = y * gamma[k] + beta[k]
        y = 0.5 * y * (1.0 + lax.erf(y * jnp.float32(_SQRT_HALF)))
        xf = xf + y
    return xf.astype(x.dtype)


if __name__ == "__main__":
    key = jax.random.PRNGKey(0)

    def make_inputs(k, B, h, n_blocks, dtype):
        kx, kw, kb, kg, kbeta = jax.random.split(k, 5)
        x = jax.random.normal(kx, (B, h), dtype=jnp.float32).astype(dtype)
        # Linear weights laid out (in, out) = torch Linear weight transposed: y = x @ W[k] + b
        W = jax.random.normal(kw, (n_blocks, h, h), dtype=jnp.float32) * (1.0 / jnp.sqrt(h))
        b = 0.01 * jax.random.normal(kb, (n_blocks, h), dtype=jnp.float32)
        gamma = 1.0 + 0.1 * jax.random.normal(kg, (n_blocks, h), dtype=jnp.float32)
        beta = 0.1 * jax.random.normal(kbeta, (n_blocks, h), dtype=jnp.float32)
        return x, W, b, gamma, beta

    k1, k2 = jax.random.split(key)

    # Test 1: small f32 problem, auto (generation-aware) tiling, no K split.
    x, W, b, gamma, beta = make_inputs(k1, 16, 128, 3, jnp.float32)
    out = jax.block_until_ready(resmlp(x, W, b, gamma, beta))
    ref = resmlp_ref(x, W, b, gamma, beta)
    assert out.shape == ref.shape and out.dtype == ref.dtype
    err = jnp.max(jnp.abs(out - ref))
    assert jnp.allclose(out, ref, atol=2e-3, rtol=2e-3), f"f32 mismatch vs reference: {err}"

    # Test 2: bf16 I/O, multiple batch tiles, forced K split (exercises the state scratch,
    # the (TB,h) partial-product accumulator and the 3-D grid path).
    x, W, b, gamma, beta = make_inputs(k2, 32, 256, 2, jnp.bfloat16)
    out = jax.block_until_ready(resmlp(x, W, b, gamma, beta, batch_tile=16, k_tile=128))
    ref = resmlp_ref(x, W, b, gamma, beta)
    assert out.shape == ref.shape and out.dtype == ref.dtype
    o32, r32 = out.astype(jnp.float32), ref.astype(jnp.float32)
    err = jnp.max(jnp.abs(o32 - r32))
    assert jnp.allclose(o32, r32, atol=5e-2, rtol=5e-2), f"bf16 mismatch vs reference: {err}"

    print("KERNEL_OK")
</pallas_src>

<mosaic_0001>
module attributes {stable_mosaic.version = 11 : i64} {
  func.func @_resmlp_kernel(%arg0: i32, %arg1: i32, %arg2: memref<16x128xf32, #tpu.memory_space<vmem>>, %arg3: memref<1x128x128xbf16, #tpu.memory_space<vmem>>, %arg4: memref<1x3x128xf32, #tpu.memory_space<vmem>>, %arg5: memref<16x128xf32, #tpu.memory_space<vmem>>) attributes {dimension_semantics = [#tpu.dimension_semantics<parallel>, #tpu.dimension_semantics<arbitrary>], iteration_bounds = array<i64: 1, 3>, scalar_prefetch = 0 : i64, scratch_operands = 0 : i64, tpu.core_type = #tpu.core_type<tc>, window_params = [{transform_indices = @transform_0, window_bounds = array<i64: 16, 128>}, {transform_indices = @transform_1, window_bounds = array<i64: 1, 128, 128>}, {transform_indices = @transform_2, window_bounds = array<i64: 1, 3, 128>}, {transform_indices = @transform_3, window_bounds = array<i64: 16, 128>}]} {
    %c0_i32 = arith.constant 0 : i32
    %0 = arith.cmpi eq, %arg1, %c0_i32 : i32
    %1 = arith.extui %0 : i1 to i32
    %c0_i32_0 = arith.constant 0 : i32
    %2 = arith.cmpi ne, %1, %c0_i32_0 : i32
    scf.if %2 {
      %c0_22 = arith.constant 0 : index
      %c0_23 = arith.constant 0 : index
      %48 = vector.load %arg2[%c0_22, %c0_23] : memref<16x128xf32, #tpu.memory_space<vmem>>, vector<16x128xf32>
      %c0_24 = arith.constant 0 : index
      %c0_25 = arith.constant 0 : index
      %49 = vector.load %arg5[%c0_24, %c0_25] : memref<16x128xf32, #tpu.memory_space<vmem>>, vector<16x128xf32>
      tpu.vector_store %arg5[%c0_24, %c0_25], %48 {strides = array<i32>} : memref<16x128xf32, #tpu.memory_space<vmem>>, vector<16x128xf32>,
    } else {
    }
    %c0 = arith.constant 0 : index
    %c0_1 = arith.constant 0 : index
    %3 = vector.load %arg5[%c0, %c0_1] : memref<16x128xf32, #tpu.memory_space<vmem>>, vector<16x128xf32>
    %4 = arith.truncf %3 : vector<16x128xf32> to vector<16x128xbf16>
    %c0_2 = arith.constant 0 : index
    %c0_3 = arith.constant 0 : index
    %c0_4 = arith.constant 0 : index
    %5 = vector.load %arg3[%c0_2, %c0_3, %c0_4] : memref<1x128x128xbf16, #tpu.memory_space<vmem>>, vector<1x128x128xbf16>
    %6 = vector.shape_cast %5 : vector<1x128x128xbf16> to vector<128x128xbf16>
    %cst = arith.constant dense<0.000000e+00> : vector<16x128xf32>
    %7 = tpu.matmul %4, %6, %cst {dimension_numbers = #tpu.dot_dimension_numbers<[1], [0], [0], [1], [0, 0, 1, 1], [], []>} : vector<16x128xbf16>, vector<128x128xbf16>, vector<16x128xf32> -> vector<16x128xf32>
    %c0_5 = arith.constant 0 : index
    %c0_6 = arith.constant 0 : index
    %c0_7 = arith.constant 0 : index
    %8 = vector.load %arg4[%c0_5, %c0_6, %c0_7] : memref<1x3x128xf32, #tpu.memory_space<vmem>>, vector<1x1x128xf32>
    %9 = vector.shape_cast %8 : vector<1x1x128xf32> to vector<1x128xf32>
    %10 = vector.broadcast %9 : vector<1x128xf32> to vector<16x128xf32>
    %11 = arith.addf %7, %10 : vector<16x128xf32>
    %cst_8 = arith.constant dense<0.000000e+00> : vector<16xf32>
    %12 = vector.multi_reduction <add>, %11, %cst_8 [1] : vector<16x128xf32> to vector<16xf32>
    %13 = vector.shape_cast %12 : vector<16xf32> to vector<16x1xf32>
    %14 = arith.mulf %11, %11 : vector<16x128xf32>
    %cst_9 = arith.constant dense<0.000000e+00> : vector<16xf32>
    %15 = vector.multi_reduction <add>, %14, %cst_9 [1] : vector<16x128xf32> to vector<16xf32>
    %16 = vector.shape_cast %15 : vector<16xf32> to vector<16x1xf32>
    %cst_10 = arith.constant 7.812500e-03 : f32
    %17 = vector.broadcast %cst_10 : f32 to vector<16x1xf32>
    %18 = arith.mulf %13, %17 : vector<16x1xf32>
    %cst_11 = arith.constant 7.812500e-03 : f32
    %19 = vector.broadcast %cst_11 : f32 to vector<16x1xf32>
    %20 = arith.mulf %16, %19 : vector<16x1xf32>
    %21 = arith.mulf %18, %18 : vector<16x1xf32>
    %22 = arith.subf %20, %21 : vector<16x1xf32>
    %23 = vector.broadcast %18 : vector<16x1xf32> to vector<16x128xf32>
    %24 = arith.subf %11, %23 : vector<16x128xf32>
    %cst_12 = arith.constant 9.99999974E-6 : f32
    %25 = vector.broadcast %cst_12 : f32 to vector<16x1xf32>
    %26 = arith.addf %22, %25 : vector<16x1xf32>
    %27 = math.rsqrt %26 : vector<16x1xf32>
    %28 = vector.broadcast %27 : vector<16x1xf32> to vector<16x128xf32>
    %29 = arith.mulf %24, %28 : vector<16x128xf32>
    %c0_13 = arith.constant 0 : index
    %c1 = arith.constant 1 : index
    %c0_14 = arith.constant 0 : index
    %30 = vector.load %arg4[%c0_13, %c1, %c0_14] : memref<1x3x128xf32, #tpu.memory_space<vmem>>, vector<1x1x128xf32>
    %31 = vector.shape_cast %30 : vector<1x1x128xf32> to vector<1x128xf32>
    %32 = vector.broadcast %31 : vector<1x128xf32> to vector<16x128xf32>
    %33 = arith.mulf %29, %32 : vector<16x128xf32>
    %c0_15 = arith.constant 0 : index
    %c2 = arith.constant 2 : index
    %c0_16 = arith.constant 0 : index
    %34 = vector.load %arg4[%c0_15, %c2, %c0_16] : memref<1x3x128xf32, #tpu.memory_space<vmem>>, vector<1x1x128xf32>
    %35 = vector.shape_cast %34 : vector<1x1x128xf32> to vector<1x128xf32>
    %36 = vector.broadcast %35 : vector<1x128xf32> to vector<16x128xf32>
    %37 = arith.addf %33, %36 : vector<16x128xf32>
    %cst_17 = arith.constant 5.000000e-01 : f32
    %38 = vector.broadcast %cst_17 : f32 to vector<16x128xf32>
    %39 = arith.mulf %38, %37 : vector<16x128xf32>
    %cst_18 = arith.constant 0.707106769 : f32
    %40 = vector.broadcast %cst_18 : f32 to vector<16x128xf32>
    %41 = arith.mulf %37, %40 : vector<16x128xf32>
    %42 = math.erf %41 : vector<16x128xf32>
    %cst_19 = arith.constant 1.000000e+00 : f32
    %43 = vector.broadcast %cst_19 : f32 to vector<16x128xf32>
    %44 = arith.addf %43, %42 : vector<16x128xf32>
    %45 = arith.mulf %39, %44 : vector<16x128xf32>
    %46 = arith.addf %3, %45 : vector<16x128xf32>
    %c0_20 = arith.constant 0 : index
    %c0_21 = arith.constant 0 : index
    %47 = vector.load %arg5[%c0_20, %c0_21] : memref<16x128xf32, #tpu.memory_space<vmem>>, vector<16x128xf32>
    tpu.vector_store %arg5[%c0_20, %c0_21], %46 {strides = array<i32>} : memref<16x128xf32, #tpu.memory_space<vmem>>, vector<16x128xf32>,
    return
  }
  func.func @transform_0(%arg0: i32, %arg1: i32) -> (i32, i32) {
    %c0_i32 = arith.constant 0 : i32
    %c0_i32_0 = arith.constant 0 : i32
    return %arg0, %c0_i32 : i32, i32
  }
  func.func @transform_1(%arg0: i32, %arg1: i32) -> (i32, i32, i32) {
    %c0_i32 = arith.constant 0 : i32
    %c0_i32_0 = arith.constant 0 : i32
    %c0_i32_1 = arith.constant 0 : i32
    return %arg1, %c0_i32, %c0_i32_0 : i32, i32, i32
  }
  func.func @transform_2(%arg0: i32, %arg1: i32) -> (i32, i32, i32) {
    %c0_i32 = arith.constant 0 : i32
    %c0_i32_0 = arith.constant 0 : i32
    %c0_i32_1 = arith.constant 0 : i32
    return %arg1, %c0_i32, %c0_i32_0 : i32, i32, i32
  }
  func.func @transform_3(%arg0: i32, %arg1: i32) -> (i32, i32) {
    %c0_i32 = arith.constant 0 : i32
    %c0_i32_0 = arith.constant 0 : i32
    return %arg0, %c0_i32 : i32, i32
  }
}

</mosaic_0001>

<bundles_post_ra>
// kernel: tpu_custom_call.1
= control target key start
LH: loop header
LB: loop body
LE: loop exit
PB: predicated region body
PF: predicated region fallthrough
CT: control target
= control target key end

     0   :  { %8 = vsyncpa [#allocation3], 0  ;;  %s1140_s0 = inlined_call_operand.hbm [shape: f32[16,128], index: 0, kind: input, shape index: {}]   ;;  %s1141_s1 = inlined_call_operand.hbm [shape: bf16[3,128,128], index: 1, kind: input, shape index: {}]   ;;  %s1142_s2 = inlined_call_operand.hbm [shape: f32[3,3,128], index: 2, kind: input, shape index: {}]   ;;  %s1143_s3 = inlined_call_operand.hbm [shape: f32[16,128], index: 3, kind: output, shape index: {}]  }
   0x1   :  { %9 = vsyncpa [#allocation6], 0 }
   0x2   :  { %11 = vsyncpa [#allocation6 + $0x1], 0 }
   0x3   :  { %12 = vsyncpa [#allocation4], 0  ;;  %s903_s12 = smov 0   ;;  %s905_s13 = smov 0  }
   0x4   :  { %s907_s14 = smov 0   ;;  %s909_s15 = smov 0  }
   0x5   :  { %s911_s16 = smov 0   ;;  %s913_s17 = smov 0  }
   0x6 LB: > { %s27_s18 = sadd.s32 1, %s865_s16  ;;  %s63_s19 = sadd.s32 1, %s857_s14  ;;  %s869_s17 = sphi %s913_s17, %s18_s17   ;;  %s865_s16 = sphi %s911_s16, %s1165_s16   ;;  %s861_s15 = sphi %s909_s15, %s1164_s15   ;;  %s857_s14 = sphi %s907_s14, %s1163_s14   ;;  %s853_s13 = sphi %s905_s13, %s1162_s13   ;;  %s849_s12 = sphi %s903_s12, %s1161_s12  }
   0x7   : > { %p28_p0 = scmp.ge.s32.totalorder %s27_s18, 3  ;;  %p70_p1 = scmp.ne.s32.totalorder %s857_s14, %s853_s13 }
   0x8   : > { %p71_p2 = scmp.eq.s32.totalorder %s869_s17, 0  ;;  %p619_p4 = scmp.lt.s32.totalorder %s869_s17, 3 }
   0x9   : > { %s1167_s18 = smov (%p28_p0, %s27_s18), 0  ;;  %s168_s21 = sand.u32 1, %s869_s17  }
   0xa   : > { %p72_p3 = por %p71_p2, %p70_p1  ;;  %s60_s20 = ssub.s32 %s865_s16, %s1167_s18 }
   0xb   : > { %p61_p5 = scmp.eq.s32.totalorder %s60_s20, 0  ;;  %s170_s22 = sand.u32 1, %s857_s14  }
   0xc   : > { %s565_s23 = sshll.u32 %s865_s16, 10  ;;  %s540_s25 = sshll.u32 %s170_s22, 6 }
   0xd   : > { %s947_s24 = scalar_select %p61_p5, %s857_s14, %s63_s19  }
   0xe   : > { %s954_s28 = scalar_lea.hbm %s1141_s1, %s565_s23  ;;  %p956_p6 = pnand %p619_p4, %p72_p3 }
   0xf   : > { %s172_s30 = scalar_lea.vmem [#allocation5], %s540_s25  ;;  %s962_s5 = scalar_lea.sflag [#allocation6], %s168_s21 }
  0x10   : > { %s1150_s29 = scalar_select %p956_p6, 1, 0 }
  0x11   : > { %s179_s4 = sshll.u32 %s172_s30, 4  ;;  %s697_s6 = scalar_lea.hbm %s954_s28, 1024  ;;  %s960_s4 = int_to_ptr.vmem [resolvable:$true] %s179_s4 }
  0x12   : > { %p698_p7 = scmp.ne.s32.totalorder %s954_s28, %s697_s6  ;;  %p1145_p8 = pneg %p956_p6 }
  0x13   : > { %s702_s9 = scalar_lea.hbm %s1141_s1, 3072  ;;  %p703_p11 = scmp.lt.u32.totalorder %s954_s28, %s1141_s1 }
  0x14   : > { %p700_p9 = pnand %p1145_p8, %p698_p7  ;;  %p704_p12 = scmp.lt.u32.totalorder %s702_s9, %s697_s6 }
  0x15   : > { %p706_p0 = scmp.lt.u32.totalorder %s697_s6, %s954_s28 }
  0x16   : > { %p701_p10 = pneg %p700_p9  ;;  %p705_p13 = por %p704_p12, %p703_p11 }
  0x18   : > { %p707_p1 = por %p706_p0, %p705_p13 }
  0x1a   : > { %p708_p2 = pnand %p707_p1, %p701_p10 }
  0x1c   : > { %711 = shalt.err (!%p708_p2)
}
  0x1d   : > { %s712_s19 = scalar_lea.vmem %s960_s4, 1024  ;;  %s871_s20 = smov [#allocation5]  }
  0x1e   : > { %p713_p3 = scmp.ne.s32.totalorder %s960_s4, %s712_s19  ;;  %s717_s21 = sshll.u32 %s871_s20, 4  ;;  %s718_s21 = int_to_ptr.vmem [resolvable:$false] %s717_s21 }
  0x1f   : > { %s719_s23 = scalar_lea.vmem %s718_s21, 2048  ;;  %p720_p7 = scmp.lt.s32.totalorder %s960_s4, %s718_s21 }
  0x20   : > { %p715_p4 = pnand %p713_p3, %p1145_p8  ;;  %p721_p9 = scmp.lt.s32.totalorder %s719_s23, %s712_s19 }
  0x22   : > { %p716_p5 = pneg %p715_p4  ;;  %p722_p11 = por %p721_p9, %p720_p7 }
  0x24   : > { %p723_p12 = pnand %p722_p11, %p716_p5 }
  0x26   : > { %726 = shalt.err (!%p723_p12)
}
  0x27   : > { %s872_s25 = smov 64   ;;  %s873_s26 = smov 4  }
  0x28   : > { %614 = dma.hbm_to_vmem [thread:$0]  (!%p956_p6), %s954_s28, 1024, %s960_s4, %s962_s5, %s872_s25, %s872_s25, %s873_s26  }
  0x29   : > { %s991_s27 = sadd.s32 4294967295, %s869_s17   ;;  %p76_p10 = scmp.ne.s32.totalorder %s853_s13, %s849_s12 }
  0x2a   : > { %p1144_p13 = scmp.eq.s32.totalorder %s991_s27, 0  ;;  %p537_p0 = scmp.ge.s32.totalorder %s869_s17, 1 }
  0x2b   : > { %p139_p1 = scmp.lt.s32.totalorder %s869_s17, 4  ;;  %s874_s28 = smov [#allocation2]  }
  0x2c   : > { %p1000_p2 = por %p1144_p13, %p76_p10  ;;  %s154_s4 = sshll.u32 %s874_s28, 4  ;;  %s1010_s4 = int_to_ptr.vmem [resolvable:$true] %s154_s4 }
  0x2d   : > { %p1004_p3 = pnand %p537_p0, %p139_p1  ;;  %s543_s12 = sshll.u32 %s170_s22, 2 }
  0x2e   : > { %s1151_s30 = scalar_select %p1000_p2, 1, 0 }
  0x2f   : > { %s1152_s6 = scalar_select %p1004_p3, 1, 0 }
  0x30   : > { %p607_p4 = pneg %p1004_p3  ;;  %s544_s8 = sshll.u32 %s865_s16, 6 }
  0x31   : > { %s193_s9 = scalar_lea.vmem [#allocation7], %s543_s12  ;;  %s1024_s20 = scalar_lea.hbm %s1142_s2, %s544_s8 }
  0x32   : > { %p1016_p5 = pnand %p607_p4, %p1144_p13  ;;  %s200_s10 = sshll.u32 %s193_s9, 4  ;;  %s201_s10 = int_to_ptr.vmem [resolvable:$true] %s200_s10 }
  0x33   : > { %s727_s25 = scalar_lea.hbm %s1140_s0, 256 }
  0x34   : > { %p728_p7 = scmp.ne.s32.totalorder %s1140_s0, %s727_s25  ;;  %p729_p9 = pneg %p1016_p5 }
  0x35   : > { %p734_p10 = scmp.lt.u32.totalorder %s727_s25, %s1140_s0 }
  0x36   : > { %p730_p11 = pnand %p729_p9, %p728_p7 }
  0x38   : > { %p731_p12 = pneg %p730_p11 }
  0x3a   : > { %p736_p0 = pnand %p734_p10, %p731_p12 }
  0x3c   : > { %739 = shalt.err (!%p736_p0)
}
  0x3d   : > { %s740_s8 = scalar_lea.vmem %s1010_s4, 256  ;;  %p748_p8 = scmp.lt.s32.totalorder %s1010_s4, %s1010_s4 }
  0x3e   : > { %p741_p1 = scmp.ne.s32.totalorder %s1010_s4, %s740_s8  ;;  %p749_p2 = scmp.lt.s32.totalorder %s740_s8, %s740_s8 }
  0x40   : > { %p743_p4 = pnand %p741_p1, %p729_p9  ;;  %p750_p3 = por %p749_p2, %p748_p8 }
  0x42   : > { %p744_p13 = pneg %p743_p4 }
  0x44   : > { %p751_p6 = pnand %p750_p3, %p744_p13 }
  0x46   : > { %754 = shalt.err (!%p751_p6)
}
  0x47   : > { %s875_s9 = smov 128   ;;  %s876_s11 = smov 8  }
  0x48   : > { %610 = dma.hbm_to_vmem [thread:$0]  (!%p1016_p5), %s1140_s0, 256, %s1010_s4, [#allocation3], %s875_s9, %s875_s9, %s876_s11  }
  0x49   : > { %s755_s23 = scalar_lea.hbm %s1024_s20, 64  ;;  %p1154_p8 = scmp.ne.s32.totalorder %s1150_s29, 0 }
  0x4a   : > { %p756_p7 = scmp.ne.s32.totalorder %s1024_s20, %s755_s23  ;;  %s760_s22 = scalar_lea.hbm %s1142_s2, 192 }
  0x4b   : > { %p1155_p13 = pneg %p1154_p8  ;;  %p761_p3 = scmp.lt.u32.totalorder %s1024_s20, %s1142_s2 }
  0x4c   : > { %p762_p9 = scmp.lt.u32.totalorder %s760_s22, %s755_s23  ;;  %p764_p12 = scmp.lt.u32.totalorder %s755_s23, %s1024_s20 }
  0x4d   : > { %p758_p6 = pnand %p756_p7, %p1155_p13 }
  0x4e   : > { %p763_p11 = por %p762_p9, %p761_p3 }
  0x4f   : > { %p759_p2 = pneg %p758_p6 }
  0x50   : > { %p765_p10 = por %p764_p12, %p763_p11 }
  0x52   : > { %p766_p5 = pnand %p765_p10, %p759_p2 }
  0x54   : > { %769 = shalt.err (!%p766_p5)
}
  0x55   : > { %s770_s4 = scalar_lea.vmem %s201_s10, 64  ;;  %p1156_p1 = pmov %p1155_p13 }
  0x56   : > { %p771_p0 = scmp.ne.s32.totalorder %s201_s10, %s770_s4  ;;  %s877_s7 = smov [#allocation7]  }
  0x57   : > { %s775_s8 = sshll.u32 %s877_s7, 4  ;;  %s776_s8 = int_to_ptr.vmem [resolvable:$false] %s775_s8 }
  0x58   : > { %p773_p4 = pnand %p771_p0, %p1156_p1  ;;  %s777_s9 = scalar_lea.vmem %s776_s8, 128 }
  0x59   : > { %p778_p13 = scmp.lt.s32.totalorder %s201_s10, %s776_s8  ;;  %p779_p6 = scmp.lt.s32.totalorder %s777_s9, %s770_s4 }
  0x5a   : > { %p774_p7 = pneg %p773_p4 }
  0x5b   : > { %p780_p3 = por %p779_p6, %p778_p13 }
  0x5d   : > { %p781_p9 = pnand %p780_p3, %p774_p7 }
  0x5f   : > { %784 = shalt.err (!%p781_p9)
}
  0x60   : > { %617 = dma.hbm_to_vmem [thread:$0]  (!%p1154_p8), %s1024_s20, 64, %s201_s10, %s962_s5  }
  0x61   : > { %p1157_p2 = scmp.ne.s32.totalorder %s1152_s6, 0 }
  0x62   : > { %p1158_p11 = scmp.eq.s32.totalorder (!%p1157_p2), %s991_s27, 0 }
  0x63   : > { %209 = sbr.rel (%p1157_p2) target bundleno = 574 (0x23e), region = 32 }
  0x6a   : > { %836 = dma.done.wait (%p1158_p11), [#allocation3], 256   ;;  %p1159_p12 = pmov %p1158_p11 }
  0x6b   : > { %s215_s11 = sand.u32 1, %s991_s27   ;;  %s217_s19 = sand.u32 1, %s853_s13  }
  0x6c   : > { %838 = vsyncadd (%p1159_p12), [#allocation3], 4294967040  ;;  %s547_s21 = sshll.u32 %s217_s19, 6  ;;  %s216_s23 = scalar_lea.sflag [#allocation6], %s215_s11 }
  0x6d   : > { %s1075_s29 = scalar_lea.vmem [#allocation5], %s547_s21  ;;  %p1160_p10 = scmp.ne.s32.totalorder %s1151_s30, 0 }
  0x6f   : > { %840 = dma.done.wait (%p1160_p10), %s216_s23, 1088  }
  0x70   : > { %842 = vsyncadd (%p1160_p10), %s216_s23, 4294966208  ;;  %s548_s5 = sshll.u32 %s217_s19, 2  ;;  %p549_p8 = scmp.ne.s32.totalorder %s861_s15, 0 }
  0x71   : > { %s1081_s6 = scalar_lea.vmem [#allocation7], %s548_s5  ;;  %v258_v0 = vld [vmem:[#allocation2] sm:$0xff] (!%p549_p8)  ;;  %v259_v1 = vld [vmem:[#allocation2 + $0x8] sm:$0xff] (!%p549_p8) }
  0x72   : > { %257 = sbr.rel (%p549_p8) target bundleno = 121 (0x79), region = 48  ;;  %260 = vst [vmem:[#allocation8] sm:$0xff] (!%p549_p8), %v258_v0  ;;  %261 = vst [vmem:[#allocation8 + $0x8] sm:$0xff] (!%p549_p8), %v259_v1 }
  0x79 PF: > { %v681_v2 = vld [vmem:[%s1075_s29] sm:$0xff]   ;;  %v878_v3 = vmov 0.0   ;;  %v682_v4 = vld [vmem:[%s1075_s29 + $0x8] sm:$0xff]   ;;  %vm879_vm0 = vmmov 0   ;;  %v683_v5 = vld [vmem:[%s1075_s29 + $0x10] sm:$0xff]   ;;  %s880_s15 = smov [#allocation8]  }
  0x7a   : > { %575 = vmatprep.subr.bf16.mxu0 %v878_v3  ;;  %591 = vmatprep.mubr.msk.bf16.mxu0 %vm879_vm0, %v878_v3  ;;  %v684_v6 = vld [vmem:[%s1075_s29 + $0x18] sm:$0xff]   ;;  %v685_v7 = vld [vmem:[%s1075_s29 + $0x20] sm:$0xff]   ;;  %v686_v8 = vld [vmem:[%s1075_s29 + $0x28] sm:$0xff]   ;;  %s438_s30 = sshll.u32 %s880_s15, 4  ;;  %p621_p5 = scmp.eq.s32.totalorder %s991_s27, 2  ;;  %s439_s30 = int_to_ptr.vmem [resolvable:$true] %s438_s30 }
  0x7b   : > { %576 = vmatpush3.bf16.msra.mxu0 %v681_v2  ;;  %v687_v9 = vld [vmem:[%s1075_s29 + $0x30] sm:$0xff]   ;;  %v688_v10 = vld [vmem:[%s1075_s29 + $0x38] sm:$0xff]   ;;  %v262_v11 = vld [vmem:[#allocation8] sm:$0xff]  ;;  %s785_s10 = scalar_lea.vmem %s439_s30, 256  ;;  %p792_p7 = scmp.lt.s32.totalorder %s439_s30, %s439_s30 }
  0x7c   : > { %577 = vmatprep.subr.bf16.mxu0 %v878_v3  ;;  %v1092_v12 = vld [vmem:[#allocation8 + $0x8] sm:$0xff]  ;;  %v550_v14 = vld [vmem:[%s1081_s6] ss:$0 sm:$0xff]  ;;  %v559_v39 = vld [vmem:[%s1081_s6 + $0x1] ss:$0 sm:$0xff]  ;;  %p786_p0 = scmp.ne.s32.totalorder %s439_s30, %s785_s10  ;;  %p793_p13 = scmp.lt.s32.totalorder %s785_s10, %s785_s10 }
  0x7d   : > { %v264_v13 = vpack.c.bf16 %v1092_v12, %v262_v11  ;;  %v560_v41 = vld [vmem:[%s1081_s6 + $0x2] ss:$0 sm:$0xff] }
  0x7e   : > { %p787_p1 = pnand %p786_p0, %p621_p5  ;;  %p794_p6 = por %p793_p13, %p792_p7 }
  0x7f   : > { %578 = vmatpush3.bf16.msra.mxu0 %v682_v4 }
  0x80   : > { %579 = vmatprep.subr.bf16.mxu0 %v878_v3  ;;  %p788_p4 = pneg %p787_p1 }
  0x82   : > { %p795_p3 = pnand %p794_p6, %p788_p4 }
  0x83   : > { %580 = vmatpush3.bf16.msra.mxu0 %v683_v5 }
  0x84   : > { %581 = vmatprep.subr.bf16.mxu0 %v878_v3 }
  0x87   : > { %582 = vmatpush3.bf16.msra.mxu0 %v684_v6 }
  0x88   : > { %583 = vmatprep.subr.bf16.mxu0 %v878_v3 }
  0x8b   : > { %584 = vmatpush3.bf16.msra.mxu0 %v685_v7 }
  0x8c   : > { %585 = vmatprep.subr.bf16.mxu0 %v878_v3 }
  0x8f   : > { %586 = vmatpush3.bf16.msra.mxu0 %v686_v8 }
  0x90   : > { %587 = vmatprep.subr.bf16.mxu0 %v878_v3 }
  0x93   : > { %588 = vmatpush3.bf16.msra.mxu0 %v687_v9 }
  0x94   : > { %589 = vmatprep.subr.bf16.mxu0 %v878_v3 }
  0x97   : > { %590 = vmatpush3.bf16.msra.mxu0 %v688_v10 }
  0x9a   : > { %592 = vmatmul.mubr.bf16.vlgmr.msra.gmra.mrb[0].mxu0 %v264_v13 }
 0x16d   : > { %v368_v15 = vpop.f32.mrb[0].mxu0 }
 0x16e   : > { %v369_v16 = vadd.f32 %v550_v14, %v368_v15  ;;  %v593_v17 = vpop.f32.mrb[1].mxu0 }
 0x16f   : > { %v371_v18 = vpop.f32.mrb[2].mxu0 }
 0x170   : > { %v372_v19 = vadd.f32 %v550_v14, %v371_v18  ;;  %375 = vadd.xlane.f32.xlu0 %v369_v16  ;;  %v594_v20 = vpop.f32.mrb[3].mxu0  ;;  %v379_v21 = vmul.f32 %v369_v16, %v369_v16 }
 0x172   : > { %381 = vadd.xlane.f32.xlu1 %v379_v21  ;;  %v380_v22 = vmul.f32 %v372_v19, %v372_v19 }
 0x174   : > { %377 = vadd.xlane.f32.xlu0 %v372_v19 }
 0x176   : > { %383 = vadd.xlane.f32.xlu1 %v380_v22 }
 0x1fd   : > { %v376_v23 = vpop.xlane.xlu0 %375 }
 0x1fe   : > { %v385_v24 = vmul.f32 0.0078125, %v376_v23 }
 0x1ff   : > { %v382_v25 = vpop.xlane.xlu1 %381 }
 0x200   : > { %v389_v26 = vmul.f32 %v385_v24, %v385_v24  ;;  %v387_v27 = vmul.f32 0.0078125, %v382_v25  ;;  %v393_v37 = vsub.f32 %v369_v16, %v385_v24 }
 0x201   : > { %v378_v28 = vpop.xlane.xlu0 %377 }
 0x202   : > { %v391_v29 = vsub.f32 %v387_v27, %v389_v26  ;;  %v386_v30 = vmul.f32 0.0078125, %v378_v28 }
 0x203   : > { %v384_v31 = vpop.xlane.xlu1 %383 }
 0x204   : > { %v395_v32 = vadd.f32 1e-05, %v391_v29  ;;  %v390_v33 = vmul.f32 %v386_v30, %v386_v30  ;;  %v388_v34 = vmul.f32 0.0078125, %v384_v31  ;;  %v394_v43 = vsub.f32 %v372_v19, %v386_v30 }
 0x206   : > { %689 = vrsqrt.f32 %v395_v32  ;;  %v392_v35 = vsub.f32 %v388_v34, %v390_v33 }
 0x208   : > { %v396_v36 = vadd.f32 1e-05, %v392_v35 }
 0x20a   : > { %691 = vrsqrt.f32 %v396_v36 }
 0x210   : > { %v690_v38 = vpop.eup %689 }
 0x211   : > { %v399_v40 = vmul.f32 %v690_v38, %v393_v37 }
 0x213   : > { %v406_v42 = vmul.f32 %v559_v39, %v399_v40 }
 0x214   : > { %v692_v44 = vpop.eup %691 }
 0x215   : > { %v400_v45 = vmul.f32 %v692_v44, %v394_v43  ;;  %v413_v46 = vadd.f32 %v560_v41, %v406_v42 }
 0x217   : > { %v407_v47 = vmul.f32 %v559_v39, %v400_v45  ;;  %v417_v48 = vmul.f32 0.70710677, %v413_v46  ;;  %v415_v52 = vmul.f32 0.5, %v413_v46 }
 0x219   : > { %v414_v49 = vadd.f32 %v560_v41, %v407_v47  ;;  %693 = verf.f32 %v417_v48 }
 0x21b   : > { %v418_v50 = vmul.f32 0.70710677, %v414_v49  ;;  %v416_v56 = vmul.f32 0.5, %v414_v49 }
 0x21d   : > { %695 = verf.f32 %v418_v50 }
 0x223   : > { %v694_v51 = vpop.eup %693 }
 0x224   : > { %v421_v53 = vadd.f32 1.0, %v694_v51 }
 0x226   : > { %v423_v54 = vmul.f32 %v421_v53, %v415_v52 }
 0x227   : > { %v696_v55 = vpop.eup %695 }
 0x228   : > { %v422_v57 = vadd.f32 1.0, %v696_v55  ;;  %v425_v58 = vadd.f32 %v423_v54, %v262_v11 }
 0x22a   : > { %v424_v59 = vmul.f32 %v422_v57, %v416_v56  ;;  %427 = vst [vmem:[#allocation8] sm:$0xff] %v425_v58 }
 0x22c   : > { %v426_v60 = vadd.f32 %v424_v59, %v1092_v12 }
 0x22e   : > { %428 = vst [vmem:[#allocation8 + $0x8] sm:$0xff] %v426_v60 }
 0x22f   : > { %798 = shalt.err (!%p795_p3)
}
 0x230   : > { %s799_s26 = scalar_lea.hbm %s1143_s3, 256 }
 0x231   : > { %p800_p9 = scmp.ne.s32.totalorder %s1143_s3, %s799_s26  ;;  %p805_p12 = scmp.lt.u32.totalorder %s799_s26, %s1143_s3 }
 0x233   : > { %p801_p2 = pnand %p800_p9, %p621_p5 }
 0x235   : > { %p802_p11 = pneg %p801_p2 }
 0x237   : > { %p807_p10 = pnand %p805_p12, %p802_p11 }
 0x239   : > { %810 = shalt.err (!%p807_p10)
}
 0x23a   : > { %s881_s7 = smov 128   ;;  %s882_s8 = smov 8  }
 0x23b   : > { %604 = dma.vmem_to_hbm [thread:$0]  (%p621_p5), %s439_s30, 256, %s1143_s3, [#allocation4], %s881_s7, %s881_s7, %s882_s8  }
 0x23c   : > { %844 = dma.done.wait (%p621_p5), [#allocation4], 256  }
 0x23d   : > { %846 = vsyncadd (%p621_p5), [#allocation4], 4294967040 }
 0x23e PF: > { %s18_s17 = sadd.s32 1, %s869_s17   ;;  %s1161_s12 = smov %s853_s13 }
 0x23f   : > { %p15_p8 = scmp.ge.s32.totalorder %s18_s17, 5   ;;  %s1162_s13 = smov %s857_s14 }
 0x240   : > { %s1163_s14 = smov %s947_s24  ;;  %s1164_s15 = smov %s865_s16 }
 0x241   : > { %s1165_s16 = smov %s1167_s18  ;;  %17 = sbr.rel (!%p15_p8) target bundleno = 6 (0x6), region = 91 }
 0x248   :  { %454 = vsyncpa [#allocation3], 1 }
 0x249   :  { %456 = vsyncpa [#allocation3 + $0x1], 1 }
 0x24a   :  { %457 = vsyncpa [#allocation6], 1 }
 0x24b   :  { %459 = vsyncpa [#allocation6 + $0x1], 1 }
 0x24c   :  { %460 = vsyncpa [#allocation4], 1 }
 0x24d   :  { %462 = vsyncpa [#allocation4 + $0x1], 1 }

</bundles_post_ra>
